<compile_context>
chip_gen: v7x
topology: tpu7x:2x2x1
jax: 0.10.0
libtpu: 0.0.40
codegen_flags: <defaults>
</compile_context>

<pallas_src>
import math
import jax
import jax.numpy as jnp
from jax import lax
from jax.experimental import pallas as pl
from jax.experimental.pallas import tpu as pltpu  # noqa: F401

# ---- model hyperparameters (small, consistent with the module) ----
D_MODEL = 32
NHEAD = 4
HEAD_DIM = D_MODEL // NHEAD
L = 8      # target sequence length (queries)
S = 16     # key/value sequence length
N = 2      # batch
LN_EPS = 1e-5

LN_ROWS = L * N                      # 16: query rows per head-block (row = l*N + n)
SN_ROWS = S * N                      # 32: key/value rows per head-block (row = s*N + n)
QKV_ROWS = LN_ROWS + 2 * SN_ROWS     # 80: stacked q|k|v projection rows
ATT_ROWS = NHEAD * LN_ROWS           # 64: fused score rows   (h-major)
ATT_COLS = NHEAD * SN_ROWS           # 128: fused score cols  (h-major)

# the in-kernel block-diagonal mask uses shift/and tricks -> need powers of two
assert LN_ROWS & (LN_ROWS - 1) == 0
assert SN_ROWS & (SN_ROWS - 1) == 0
assert N & (N - 1) == 0
_LOG2_LN = LN_ROWS.bit_length() - 1   # 4
_LOG2_SN = SN_ROWS.bit_length() - 1   # 5
_N_MASK = N - 1                       # 1


def _self_attn_layer_kernel(tgt_ref, tgtk_ref, qpos_ref, kpos_ref,
                            wqkv_ref, bqkv_ref, woT_ref, bo_ref,
                            gamma_ref, beta_ref, out_ref):
    E, hd = D_MODEL, HEAD_DIM

    tgt = tgt_ref[...]                        # (L*N, E) = (16, 32), rows (l, n)
    tgtk = tgtk_ref[...]                      # (S*N, E) = (32, 32), rows (s, n)

    q_in = tgt + qpos_ref[...]                # with_pos_embed(tgt, query_pos)
    k_in = tgtk + kpos_ref[...]               # with_pos_embed(tgt_k, key_pos)
    v_in = tgtk                               # value = tgt_k

    # ---- fused QKV projection: ONE 2-D matmul (80,32)@(32,96) ----
    x_all = jnp.concatenate([q_in, k_in, v_in], axis=0)            # (80, 32)
    proj = jnp.dot(x_all, wqkv_ref[...],
                   preferred_element_type=jnp.float32) + bqkv_ref[...]   # (80, 96)

    # diagonal blocks (q rows -> q cols, etc.); q is pre-scaled by 1/sqrt(hd)
    Q = proj[:LN_ROWS, 0:E]                                        # (16, 32)
    K = proj[LN_ROWS:LN_ROWS + SN_ROWS, E:2 * E]                   # (32, 32)
    V = proj[LN_ROWS + SN_ROWS:, 2 * E:3 * E]                      # (32, 32)

    # ---- head-stacked slabs: row = h*block + (token*N + n) ----
    q_big = jnp.concatenate([Q[:, h * hd:(h + 1) * hd] for h in range(NHEAD)],
                            axis=0)                                 # (64, 8)
    k_big = jnp.concatenate([K[:, h * hd:(h + 1) * hd] for h in range(NHEAD)],
                            axis=0)                                 # (128, 8)
    v_big = jnp.concatenate([V[:, h * hd:(h + 1) * hd] for h in range(NHEAD)],
                            axis=0)                                 # (128, 8)

    # ---- ALL (head, batch) attention scores in ONE matmul ----
    scores = jnp.dot(q_big, k_big.T,
                     preferred_element_type=jnp.float32)            # (64, 128)

    # block-diagonal validity mask: same head block AND same batch element
    r_idx = lax.broadcasted_iota(jnp.int32, (ATT_ROWS, ATT_COLS), 0)
    c_idx = lax.broadcasted_iota(jnp.int32, (ATT_ROWS, ATT_COLS), 1)
    same_head = jnp.right_shift(r_idx, _LOG2_LN) == jnp.right_shift(c_idx, _LOG2_SN)
    same_batch = (r_idx & _N_MASK) == (c_idx & _N_MASK)
    valid = jnp.logical_and(same_head, same_batch)
    scores = jnp.where(valid, scores, -1e30)

    # ---- softmax (masked entries exp to exactly 0 -> fusion is exact) ----
    m = jnp.max(scores, axis=-1, keepdims=True)
    p = jnp.exp(scores - m)
    denom = jnp.sum(p, axis=-1, keepdims=True)
    inv = pl.reciprocal(denom, approx=True)           # EUP slot
    inv = inv * (2.0 - denom * inv)                   # one Newton refinement
    p = p * inv

    # ---- context for all heads/batches in ONE matmul ----
    o_big = jnp.dot(p, v_big, preferred_element_type=jnp.float32)   # (64, 8)

    # merge heads back to (L*N, E): column block h <- row block h
    o = jnp.concatenate([o_big[h * LN_ROWS:(h + 1) * LN_ROWS, :]
                         for h in range(NHEAD)], axis=1)            # (16, 32)

    # ---- output projection: ONE (16,32)@(32,32) matmul ----
    attn = jnp.dot(o, woT_ref[...],
                   preferred_element_type=jnp.float32) + bo_ref[...]

    # ---- residual (dropout p=0 -> identity) + LayerNorm over E ----
    x = tgt + attn
    mu = jnp.mean(x, axis=-1, keepdims=True)
    xc = x - mu
    var = jnp.mean(xc * xc, axis=-1, keepdims=True)
    y = xc * lax.rsqrt(var + LN_EPS)
    out_ref[...] = (y * gamma_ref[...] + beta_ref[...]).astype(out_ref.dtype)


def pack_params(p):
    """One-time layout plumbing OUTSIDE the per-call path: pre-transpose the
    projection weights, fold the 1/sqrt(head_dim) scale into Wq/bq, and pack
    q|k|v into a single (E, 3E) weight / (1, 3E) bias.  No per-head splitting,
    no batch replication."""
    E = D_MODEL
    scale = 1.0 / math.sqrt(HEAD_DIM)
    w_qkv = jnp.concatenate([p["wq"].T * scale, p["wk"].T, p["wv"].T], axis=1)  # (E, 3E)
    b_qkv = jnp.concatenate([p["bq"].reshape(1, E) * scale,
                             p["bk"].reshape(1, E),
                             p["bv"].reshape(1, E)], axis=1)                    # (1, 3E)
    return dict(w_qkv=w_qkv, b_qkv=b_qkv, woT=p["wo"].T, bo=p["bo"],
                gamma=p["gamma"], beta=p["beta"])


@jax.jit
def self_attention_layer2(tgt, tgt_k, query_pos, key_pos, packed):
    """tgt: (L, N, E), tgt_k: (S, N, E), query_pos: (L, N, E), key_pos: (S, N, E).
    Returns (L, N, E) — matches forward_post with tgt_mask=None, padding_mask=None."""
    # Row-major merges only (free): (seq, batch, E) -> (seq*batch, E); no transposes.
    tgt2d = tgt.reshape(L * N, D_MODEL)
    tgtk2d = tgt_k.reshape(S * N, D_MODEL)
    qpos2d = query_pos.reshape(L * N, D_MODEL)
    kpos2d = key_pos.reshape(S * N, D_MODEL)

    # Single gridless invocation: total resident data << VMEM, so no per-step
    # pipeline overhead.  (v7x-only option: grid=(2,) over batch + "parallel"
    # dimension_semantics to use the 2nd TensorCore; skipped — latency-bound.)
    out2d = pl.pallas_call(
        _self_attn_layer_kernel,
        out_shape=jax.ShapeDtypeStruct((L * N, D_MODEL), tgt.dtype),
    )(tgt2d, tgtk2d, qpos2d, kpos2d,
      packed["w_qkv"], packed["b_qkv"], packed["woT"], packed["bo"],
      packed["gamma"], packed["beta"])

    return out2d.reshape(L, N, D_MODEL)


def _xavier_uniform(key, shape):
    fan_in, fan_out = shape[1], shape[0]
    limit = math.sqrt(6.0 / (fan_in + fan_out))
    return jax.random.uniform(key, shape, jnp.float32, -limit, limit)


def make_params(key):
    ks = jax.random.split(key, 8)
    E = D_MODEL
    # nn.MultiheadAttention: in_proj_weight is (3E, E); split into q/k/v rows.
    in_proj_w = _xavier_uniform(ks[0], (3 * E, E))
    return dict(
        wq=in_proj_w[:E],
        wk=in_proj_w[E:2 * E],
        wv=in_proj_w[2 * E:],
        # in_proj_bias / out_proj.bias init to zeros in torch; keep zeros.
        bq=jnp.zeros((1, E), jnp.float32),
        bk=jnp.zeros((1, E), jnp.float32),
        bv=jnp.zeros((1, E), jnp.float32),
        wo=_xavier_uniform(ks[1], (E, E)),
        bo=jnp.zeros((1, E), jnp.float32),
        # LayerNorm default init (weight=1, bias=0); _reset_parameters skips 1-D params.
        gamma=jnp.ones((1, E), jnp.float32),
        beta=jnp.zeros((1, E), jnp.float32),
    )


def reference_jax(tgt, tgt_k, query_pos, key_pos, p):
    """Pure-JAX reference of forward_post (dropout=0, no masks)."""
    q = tgt + query_pos
    k = tgt_k + key_pos
    v = tgt_k

    def proj(x, w, b):  # x: (T, N, E)
        return jnp.einsum("tne,fe->tnf", x, w) + b[0]

    Q, K, V = proj(q, p["wq"], p["bq"]), proj(k, p["wk"], p["bk"]), proj(v, p["wv"], p["bv"])

    def split_heads(x, T):  # (T, N, E) -> (N, H, T, hd)
        return x.reshape(T, N, NHEAD, HEAD_DIM).transpose(1, 2, 0, 3)

    Qh, Kh, Vh = split_heads(Q, L), split_heads(K, S), split_heads(V, S)
    scores = jnp.einsum("nhld,nhsd->nhls", Qh, Kh) / math.sqrt(HEAD_DIM)
    attn = jax.nn.softmax(scores, axis=-1)
    o = jnp.einsum("nhls,nhsd->nhld", attn, Vh)          # (N, H, L, hd)
    o = o.transpose(2, 0, 1, 3).reshape(L, N, D_MODEL)   # (L, N, E)
    o = jnp.einsum("lne,fe->lnf", o, p["wo"]) + p["bo"][0]

    x = tgt + o
    mu = jnp.mean(x, axis=-1, keepdims=True)
    var = jnp.mean((x - mu) ** 2, axis=-1, keepdims=True)
    return (x - mu) / jnp.sqrt(var + LN_EPS) * p["gamma"][0] + p["beta"][0]


if __name__ == "__main__":
    key = jax.random.PRNGKey(0)
    k_tgt, k_tgtk, k_qp, k_kp, k_par = jax.random.split(key, 5)

    tgt = jax.random.normal(k_tgt, (L, N, D_MODEL), jnp.float32)
    tgt_k = jax.random.normal(k_tgtk, (S, N, D_MODEL), jnp.float32)
    # Stand-in for PositionEmbeddingSine outputs (same shape as the features).
    query_pos = jax.random.normal(k_qp, (L, N, D_MODEL), jnp.float32)
    key_pos = jax.random.normal(k_kp, (S, N, D_MODEL), jnp.float32)

    params = make_params(k_par)
    packed = pack_params(params)          # hoisted out of the per-call path

    out = self_attention_layer2(tgt, tgt_k, query_pos, key_pos, packed)
    out = jax.block_until_ready(out)

    ref = reference_jax(tgt, tgt_k, query_pos, key_pos, params)
    assert out.shape == (L, N, D_MODEL)
    assert jnp.allclose(out, ref, atol=2e-4, rtol=2e-4), float(jnp.max(jnp.abs(out - ref)))

    print("KERNEL_OK")
</pallas_src>

<mosaic_0001>
module attributes {stable_mosaic.version = 11 : i64} {
  func.func @_self_attn_layer_kernel(%arg0: memref<16x32xf32, #tpu.memory_space<vmem>>, %arg1: memref<32x32xf32, #tpu.memory_space<vmem>>, %arg2: memref<16x32xf32, #tpu.memory_space<vmem>>, %arg3: memref<32x32xf32, #tpu.memory_space<vmem>>, %arg4: memref<32x96xf32, #tpu.memory_space<vmem>>, %arg5: memref<1x96xf32, #tpu.memory_space<vmem>>, %arg6: memref<32x32xf32, #tpu.memory_space<vmem>>, %arg7: memref<1x32xf32, #tpu.memory_space<vmem>>, %arg8: memref<1x32xf32, #tpu.memory_space<vmem>>, %arg9: memref<1x32xf32, #tpu.memory_space<vmem>>, %arg10: memref<16x32xf32, #tpu.memory_space<vmem>>) attributes {dimension_semantics = [], scalar_prefetch = 0 : i64, scratch_operands = 0 : i64, tpu.core_type = #tpu.core_type<tc>} {
    %c0 = arith.constant 0 : index
    %c0_0 = arith.constant 0 : index
    %0 = vector.load %arg0[%c0, %c0_0] : memref<16x32xf32, #tpu.memory_space<vmem>>, vector<16x32xf32>
    %c0_1 = arith.constant 0 : index
    %c0_2 = arith.constant 0 : index
    %1 = vector.load %arg1[%c0_1, %c0_2] : memref<32x32xf32, #tpu.memory_space<vmem>>, vector<32x32xf32>
    %c0_3 = arith.constant 0 : index
    %c0_4 = arith.constant 0 : index
    %2 = vector.load %arg2[%c0_3, %c0_4] : memref<16x32xf32, #tpu.memory_space<vmem>>, vector<16x32xf32>
    %3 = arith.addf %0, %2 : vector<16x32xf32>
    %c0_5 = arith.constant 0 : index
    %c0_6 = arith.constant 0 : index
    %4 = vector.load %arg3[%c0_5, %c0_6] : memref<32x32xf32, #tpu.memory_space<vmem>>, vector<32x32xf32>
    %5 = arith.addf %1, %4 : vector<32x32xf32>
    %6 = tpu.concatenate %3, %5, %1 in 0 : vector<16x32xf32>, vector<32x32xf32>, vector<32x32xf32> -> vector<80x32xf32>
    %c0_7 = arith.constant 0 : index
    %c0_8 = arith.constant 0 : index
    %7 = vector.load %arg4[%c0_7, %c0_8] : memref<32x96xf32, #tpu.memory_space<vmem>>, vector<32x96xf32>
    %cst = arith.constant dense<0.000000e+00> : vector<80x96xf32>
    %8 = tpu.matmul %6, %7, %cst {dimension_numbers = #tpu.dot_dimension_numbers<[1], [0], [0], [1], [0, 0, 1, 1], [], []>} : vector<80x32xf32>, vector<32x96xf32>, vector<80x96xf32> -> vector<80x96xf32>
    %c0_9 = arith.constant 0 : index
    %c0_10 = arith.constant 0 : index
    %9 = vector.load %arg5[%c0_9, %c0_10] : memref<1x96xf32, #tpu.memory_space<vmem>>, vector<1x96xf32>
    %10 = vector.broadcast %9 : vector<1x96xf32> to vector<80x96xf32>
    %11 = arith.addf %8, %10 : vector<80x96xf32>
    %12 = vector.extract_strided_slice %11 {offsets = [0, 0], sizes = [16, 32], strides = [1, 1]} : vector<80x96xf32> to vector<16x32xf32>
    %13 = vector.extract_strided_slice %11 {offsets = [16, 32], sizes = [32, 32], strides = [1, 1]} : vector<80x96xf32> to vector<32x32xf32>
    %14 = vector.extract_strided_slice %11 {offsets = [48, 64], sizes = [32, 32], strides = [1, 1]} : vector<80x96xf32> to vector<32x32xf32>
    %15 = vector.extract_strided_slice %12 {offsets = [0, 0], sizes = [16, 8], strides = [1, 1]} : vector<16x32xf32> to vector<16x8xf32>
    %16 = vector.extract_strided_slice %12 {offsets = [0, 8], sizes = [16, 8], strides = [1, 1]} : vector<16x32xf32> to vector<16x8xf32>
    %17 = vector.extract_strided_slice %12 {offsets = [0, 16], sizes = [16, 8], strides = [1, 1]} : vector<16x32xf32> to vector<16x8xf32>
    %18 = vector.extract_strided_slice %12 {offsets = [0, 24], sizes = [16, 8], strides = [1, 1]} : vector<16x32xf32> to vector<16x8xf32>
    %19 = tpu.concatenate %15, %16, %17, %18 in 0 : vector<16x8xf32>, vector<16x8xf32>, vector<16x8xf32>, vector<16x8xf32> -> vector<64x8xf32>
    %20 = vector.extract_strided_slice %13 {offsets = [0, 0], sizes = [32, 8], strides = [1, 1]} : vector<32x32xf32> to vector<32x8xf32>
    %21 = vector.extract_strided_slice %13 {offsets = [0, 8], sizes = [32, 8], strides = [1, 1]} : vector<32x32xf32> to vector<32x8xf32>
    %22 = vector.extract_strided_slice %13 {offsets = [0, 16], sizes = [32, 8], strides = [1, 1]} : vector<32x32xf32> to vector<32x8xf32>
    %23 = vector.extract_strided_slice %13 {offsets = [0, 24], sizes = [32, 8], strides = [1, 1]} : vector<32x32xf32> to vector<32x8xf32>
    %24 = tpu.concatenate %20, %21, %22, %23 in 0 : vector<32x8xf32>, vector<32x8xf32>, vector<32x8xf32>, vector<32x8xf32> -> vector<128x8xf32>
    %25 = vector.extract_strided_slice %14 {offsets = [0, 0], sizes = [32, 8], strides = [1, 1]} : vector<32x32xf32> to vector<32x8xf32>
    %26 = vector.extract_strided_slice %14 {offsets = [0, 8], sizes = [32, 8], strides = [1, 1]} : vector<32x32xf32> to vector<32x8xf32>
    %27 = vector.extract_strided_slice %14 {offsets = [0, 16], sizes = [32, 8], strides = [1, 1]} : vector<32x32xf32> to vector<32x8xf32>
    %28 = vector.extract_strided_slice %14 {offsets = [0, 24], sizes = [32, 8], strides = [1, 1]} : vector<32x32xf32> to vector<32x8xf32>
    %29 = tpu.concatenate %25, %26, %27, %28 in 0 : vector<32x8xf32>, vector<32x8xf32>, vector<32x8xf32>, vector<32x8xf32> -> vector<128x8xf32>
    %30 = tpu.transpose %24, [1, 0] : vector<128x8xf32> -> vector<8x128xf32>
    %cst_11 = arith.constant dense<0.000000e+00> : vector<64x128xf32>
    %31 = tpu.matmul %19, %30, %cst_11 {dimension_numbers = #tpu.dot_dimension_numbers<[1], [0], [0], [1], [0, 0, 1, 1], [], []>} : vector<64x8xf32>, vector<8x128xf32>, vector<64x128xf32> -> vector<64x128xf32>
    %32 = tpu.iota {dimensions = array<i32: 0>} : vector<64x128xi32>
    %33 = tpu.iota {dimensions = array<i32: 1>} : vector<64x128xi32>
    %c4_i32 = arith.constant 4 : i32
    %34 = vector.broadcast %c4_i32 : i32 to vector<64x128xi32>
    %35 = arith.shrsi %32, %34 : vector<64x128xi32>
    %c5_i32 = arith.constant 5 : i32
    %36 = vector.broadcast %c5_i32 : i32 to vector<64x128xi32>
    %37 = arith.shrsi %33, %36 : vector<64x128xi32>
    %38 = arith.cmpi eq, %35, %37 : vector<64x128xi32>
    %c1_i32 = arith.constant 1 : i32
    %39 = vector.broadcast %c1_i32 : i32 to vector<64x128xi32>
    %40 = arith.andi %32, %39 : vector<64x128xi32>
    %c1_i32_12 = arith.constant 1 : i32
    %41 = vector.broadcast %c1_i32_12 : i32 to vector<64x128xi32>
    %42 = arith.andi %33, %41 : vector<64x128xi32>
    %43 = arith.cmpi eq, %40, %42 : vector<64x128xi32>
    %44 = arith.andi %38, %43 : vector<64x128xi1>
    %cst_13 = arith.constant -1.000000e+30 : f32
    %45 = vector.broadcast %cst_13 : f32 to vector<64x128xf32>
    %46 = arith.select %44, %31, %45 : vector<64x128xi1>, vector<64x128xf32>
    %cst_14 = arith.constant dense<0xFF800000> : vector<64xf32>
    %47 = vector.multi_reduction <maximumf>, %46, %cst_14 [1] : vector<64x128xf32> to vector<64xf32>
    %48 = vector.shape_cast %47 : vector<64xf32> to vector<64x1xf32>
    %49 = vector.broadcast %48 : vector<64x1xf32> to vector<64x128xf32>
    %50 = arith.subf %46, %49 : vector<64x128xf32>
    %51 = math.exp %50 : vector<64x128xf32>
    %cst_15 = arith.constant dense<0.000000e+00> : vector<64xf32>
    %52 = vector.multi_reduction <add>, %51, %cst_15 [1] : vector<64x128xf32> to vector<64xf32>
    %53 = vector.shape_cast %52 : vector<64xf32> to vector<64x1xf32>
    %54 = tpu.reciprocal %53 {approx = true} : vector<64x1xf32> -> vector<64x1xf32>
    %55 = arith.mulf %53, %54 : vector<64x1xf32>
    %cst_16 = arith.constant 2.000000e+00 : f32
    %56 = vector.broadcast %cst_16 : f32 to vector<64x1xf32>
    %57 = arith.subf %56, %55 : vector<64x1xf32>
    %58 = arith.mulf %54, %57 : vector<64x1xf32>
    %59 = vector.broadcast %58 : vector<64x1xf32> to vector<64x128xf32>
    %60 = arith.mulf %51, %59 : vector<64x128xf32>
    %cst_17 = arith.constant dense<0.000000e+00> : vector<64x8xf32>
    %61 = tpu.matmul %60, %29, %cst_17 {dimension_numbers = #tpu.dot_dimension_numbers<[1], [0], [0], [1], [0, 0, 1, 1], [], []>} : vector<64x128xf32>, vector<128x8xf32>, vector<64x8xf32> -> vector<64x8xf32>
    %62 = vector.extract_strided_slice %61 {offsets = [0, 0], sizes = [16, 8], strides = [1, 1]} : vector<64x8xf32> to vector<16x8xf32>
    %63 = vector.extract_strided_slice %61 {offsets = [16, 0], sizes = [16, 8], strides = [1, 1]} : vector<64x8xf32> to vector<16x8xf32>
    %64 = vector.extract_strided_slice %61 {offsets = [32, 0], sizes = [16, 8], strides = [1, 1]} : vector<64x8xf32> to vector<16x8xf32>
    %65 = vector.extract_strided_slice %61 {offsets = [48, 0], sizes = [16, 8], strides = [1, 1]} : vector<64x8xf32> to vector<16x8xf32>
    %66 = tpu.concatenate %62, %63, %64, %65 in 1 : vector<16x8xf32>, vector<16x8xf32>, vector<16x8xf32>, vector<16x8xf32> -> vector<16x32xf32>
    %c0_18 = arith.constant 0 : index
    %c0_19 = arith.constant 0 : index
    %67 = vector.load %arg6[%c0_18, %c0_19] : memref<32x32xf32, #tpu.memory_space<vmem>>, vector<32x32xf32>
    %cst_20 = arith.constant dense<0.000000e+00> : vector<16x32xf32>
    %68 = tpu.matmul %66, %67, %cst_20 {dimension_numbers = #tpu.dot_dimension_numbers<[1], [0], [0], [1], [0, 0, 1, 1], [], []>} : vector<16x32xf32>, vector<32x32xf32>, vector<16x32xf32> -> vector<16x32xf32>
    %c0_21 = arith.constant 0 : index
    %c0_22 = arith.constant 0 : index
    %69 = vector.load %arg7[%c0_21, %c0_22] : memref<1x32xf32, #tpu.memory_space<vmem>>, vector<1x32xf32>
    %70 = vector.broadcast %69 : vector<1x32xf32> to vector<16x32xf32>
    %71 = arith.addf %68, %70 : vector<16x32xf32>
    %72 = arith.addf %0, %71 : vector<16x32xf32>
    %cst_23 = arith.constant dense<0.000000e+00> : vector<16xf32>
    %73 = vector.multi_reduction <add>, %72, %cst_23 [1] : vector<16x32xf32> to vector<16xf32>
    %74 = vector.shape_cast %73 : vector<16xf32> to vector<16x1xf32>
    %cst_24 = arith.constant 3.200000e+01 : f32
    %75 = vector.broadcast %cst_24 : f32 to vector<16x1xf32>
    %76 = arith.divf %74, %75 : vector<16x1xf32>
    %77 = vector.broadcast %76 : vector<16x1xf32> to vector<16x32xf32>
    %78 = arith.subf %72, %77 : vector<16x32xf32>
    %79 = arith.mulf %78, %78 : vector<16x32xf32>
    %cst_25 = arith.constant dense<0.000000e+00> : vector<16xf32>
    %80 = vector.multi_reduction <add>, %79, %cst_25 [1] : vector<16x32xf32> to vector<16xf32>
    %81 = vector.shape_cast %80 : vector<16xf32> to vector<16x1xf32>
    %cst_26 = arith.constant 3.200000e+01 : f32
    %82 = vector.broadcast %cst_26 : f32 to vector<16x1xf32>
    %83 = arith.divf %81, %82 : vector<16x1xf32>
    %cst_27 = arith.constant 9.99999974E-6 : f32
    %84 = vector.broadcast %cst_27 : f32 to vector<16x1xf32>
    %85 = arith.addf %83, %84 : vector<16x1xf32>
    %86 = math.rsqrt %85 : vector<16x1xf32>
    %87 = vector.broadcast %86 : vector<16x1xf32> to vector<16x32xf32>
    %88 = arith.mulf %78, %87 : vector<16x32xf32>
    %c0_28 = arith.constant 0 : index
    %c0_29 = arith.constant 0 : index
    %89 = vector.load %arg8[%c0_28, %c0_29] : memref<1x32xf32, #tpu.memory_space<vmem>>, vector<1x32xf32>
    %90 = vector.broadcast %89 : vector<1x32xf32> to vector<16x32xf32>
    %91 = arith.mulf %88, %90 : vector<16x32xf32>
    %c0_30 = arith.constant 0 : index
    %c0_31 = arith.constant 0 : index
    %92 = vector.load %arg9[%c0_30, %c0_31] : memref<1x32xf32, #tpu.memory_space<vmem>>, vector<1x32xf32>
    %93 = vector.broadcast %92 : vector<1x32xf32> to vector<16x32xf32>
    %94 = arith.addf %91, %93 : vector<16x32xf32>
    %c0_32 = arith.constant 0 : index
    %c0_33 = arith.constant 0 : index
    %95 = vector.load %arg10[%c0_32, %c0_33] : memref<16x32xf32, #tpu.memory_space<vmem>>, vector<16x32xf32>
    tpu.vector_store %arg10[%c0_32, %c0_33], %94 {strides = array<i32>} : memref<16x32xf32, #tpu.memory_space<vmem>>, vector<16x32xf32>,
    return
  }
}

</mosaic_0001>

<bundles_post_ra>
// kernel: self_attention_layer2.1
= control target key start
LH: loop header
LB: loop body
LE: loop exit
PB: predicated region body
PF: predicated region fallthrough
CT: control target
= control target key end

     0   :  { %15 = vsyncpa [#allocation3], 0  ;;  %s2145_s0 = inlined_call_operand.hbm [shape: f32[16,32], index: 0, kind: input, shape index: {}]   ;;  %s2146_s1 = inlined_call_operand.hbm [shape: f32[32,32], index: 1, kind: input, shape index: {}]   ;;  %s2147_s2 = inlined_call_operand.hbm [shape: f32[16,32], index: 2, kind: input, shape index: {}]   ;;  %s2148_s3 = inlined_call_operand.hbm [shape: f32[32,32], index: 3, kind: input, shape index: {}]   ;;  %s2149_s4 = inlined_call_operand.vmem [shape: f32[32,96], index: 4, kind: input, shape index: {}]   ;;  %s2150_s5 = inlined_call_operand.vmem [shape: f32[1,96], index: 5, kind: input, shape index: {}]   ;;  %s2151_s6 = inlined_call_operand.hbm [shape: f32[32,32], index: 6, kind: input, shape index: {}]   ;;  %s2152_s7 = inlined_call_operand.vmem [shape: f32[1,32], index: 7, kind: input, shape index: {}]   ;;  %s2153_s8 = inlined_call_operand.vmem [shape: f32[1,32], index: 8, kind: input, shape index: {}]   ;;  %s2154_s9 = inlined_call_operand.vmem [shape: f32[1,32], index: 9, kind: input, shape index: {}]   ;;  %s2155_s10 = inlined_call_operand.hbm [shape: f32[16,32], index: 10, kind: output, shape index: {}]  }
   0x1   :  { %16 = vsyncpa [#allocation6], 0 }
   0x2   :  { %17 = vsyncpa [#allocation9], 0 }
   0x3   :  { %18 = vsyncpa [#allocation4], 0  ;;  %s1694_s13 = smov [#allocation5]   ;;  %s1695_s15 = smov [#allocation8]  }
   0x4   :  { %s36_s14 = sshll.u32 %s1694_s13, 4  ;;  %s60_s16 = sshll.u32 %s1695_s15, 4  ;;  %s37_s14 = int_to_ptr.vmem [resolvable:$true] %s36_s14  ;;  %s1764_s16 = int_to_ptr.vmem [resolvable:$true] %s60_s16 }
   0x5   :  { %s1554_s19 = scalar_lea.hbm %s2146_s1, 512 }
   0x6   :  { %p1555_p0 = scmp.ne.s32.totalorder %s2146_s1, %s1554_s19  ;;  %p1558_p1 = scmp.lt.u32.totalorder %s1554_s19, %s2146_s1 }
   0x8   :  { %p1560_p2 = pnand %p1558_p1, %p1555_p0 }
   0xa   :  { %1563 = shalt.err (!%p1560_p2)
}
   0xb   :  { %s1564_s24 = scalar_lea.vmem %s37_s14, 512  ;;  %p1569_p4 = scmp.lt.s32.totalorder %s37_s14, %s37_s14 }
   0xc   :  { %p1565_p3 = scmp.ne.s32.totalorder %s37_s14, %s1564_s24  ;;  %p1570_p5 = scmp.lt.s32.totalorder %s1564_s24, %s1564_s24 }
   0xe   :  { %p1571_p6 = por %p1570_p5, %p1569_p4 }
  0x10   :  { %p1572_p7 = pnand %p1571_p6, %p1565_p3 }
  0x12   :  { %1575 = shalt.err (!%p1572_p7)
}
  0x13   :  { %s1696_s25 = smov 128   ;;  %s1697_s26 = smov 8  }
  0x14   :  { %42 = dma.hbm_to_vmem [thread:$0]  %s2146_s1, 512, %s37_s14, [#allocation6], %s1696_s25, %s1696_s25, %s1697_s26  }
  0x15   :  { %s1576_s11 = scalar_lea.hbm %s2148_s3, 512 }
  0x16   :  { %p1577_p8 = scmp.ne.s32.totalorder %s2148_s3, %s1576_s11  ;;  %p1580_p9 = scmp.lt.u32.totalorder %s1576_s11, %s2148_s3 }
  0x18   :  { %p1582_p10 = pnand %p1580_p9, %p1577_p8 }
  0x1a   :  { %1585 = shalt.err (!%p1582_p10)
}
  0x1b   :  { %s1586_s18 = scalar_lea.vmem %s1764_s16, 512  ;;  %p1591_p12 = scmp.lt.s32.totalorder %s1764_s16, %s1764_s16 }
  0x1c   :  { %p1587_p11 = scmp.ne.s32.totalorder %s1764_s16, %s1586_s18  ;;  %p1592_p13 = scmp.lt.s32.totalorder %s1586_s18, %s1586_s18 }
  0x1e   :  { %p1593_p0 = por %p1592_p13, %p1591_p12 }
  0x20   :  { %p1594_p1 = pnand %p1593_p0, %p1587_p11 }
  0x22   :  { %1597 = shalt.err (!%p1594_p1)
}
  0x23   :  { %66 = dma.hbm_to_vmem [thread:$0]  %s2148_s3, 512, %s1764_s16, [#allocation9], %s1696_s25, %s1696_s25, %s1697_s26  }
  0x24   :  { %s1698_s19 = smov [#allocation2]   ;;  %s1699_s21 = smov [#allocation7]  }
  0x25   :  { %s24_s20 = sshll.u32 %s1698_s19, 4  ;;  %s48_s22 = sshll.u32 %s1699_s21, 4  ;;  %s25_s20 = int_to_ptr.vmem [resolvable:$true] %s24_s20  ;;  %s1801_s22 = int_to_ptr.vmem [resolvable:$true] %s48_s22 }
  0x26   :  { %s1598_s27 = scalar_lea.hbm %s2145_s0, 256 }
  0x27   :  { %p1599_p2 = scmp.ne.s32.totalorder %s2145_s0, %s1598_s27  ;;  %p1602_p3 = scmp.lt.u32.totalorder %s1598_s27, %s2145_s0 }
  0x29   :  { %p1604_p4 = pnand %p1602_p3, %p1599_p2 }
  0x2b   :  { %1607 = shalt.err (!%p1604_p4)
}
  0x2c   :  { %s1608_s3 = scalar_lea.vmem %s25_s20, 256  ;;  %p1613_p6 = scmp.lt.s32.totalorder %s25_s20, %s25_s20 }
  0x2d   :  { %p1609_p5 = scmp.ne.s32.totalorder %s25_s20, %s1608_s3  ;;  %p1614_p7 = scmp.lt.s32.totalorder %s1608_s3, %s1608_s3 }
  0x2f   :  { %p1615_p8 = por %p1614_p7, %p1613_p6 }
  0x31   :  { %p1616_p9 = pnand %p1615_p8, %p1609_p5 }
  0x33   :  { %1619 = shalt.err (!%p1616_p9)
}
  0x34   :  { %30 = dma.hbm_to_vmem [thread:$0]  %s2145_s0, 256, %s25_s20, [#allocation3], %s1696_s25, %s1696_s25, %s1697_s26  }
  0x35   :  { %s1620_s17 = scalar_lea.hbm %s2147_s2, 256 }
  0x36   :  { %p1621_p10 = scmp.ne.s32.totalorder %s2147_s2, %s1620_s17  ;;  %p1624_p11 = scmp.lt.u32.totalorder %s1620_s17, %s2147_s2 }
  0x38   :  { %p1626_p12 = pnand %p1624_p11, %p1621_p10 }
  0x3a   :  { %1629 = shalt.err (!%p1626_p12)
}
  0x3b   :  { %s1630_s21 = scalar_lea.vmem %s1801_s22, 256  ;;  %p1635_p0 = scmp.lt.s32.totalorder %s1801_s22, %s1801_s22 }
  0x3c   :  { %p1631_p13 = scmp.ne.s32.totalorder %s1801_s22, %s1630_s21  ;;  %p1636_p1 = scmp.lt.s32.totalorder %s1630_s21, %s1630_s21 }
  0x3e   :  { %p1637_p2 = por %p1636_p1, %p1635_p0 }
  0x40   :  { %p1638_p3 = pnand %p1637_p2, %p1631_p13 }
  0x42   :  { %1641 = shalt.err (!%p1638_p3)
}
  0x43   :  { %54 = dma.hbm_to_vmem [thread:$0]  %s2147_s2, 256, %s1801_s22, [#allocation6], %s1696_s25, %s1696_s25, %s1697_s26  }
  0x44   :  { %s1700_s23 = smov [#allocation10]   ;;  %s1642_s29 = scalar_lea.hbm %s2151_s6, 512 }
  0x45   :  { %s76_s24 = sshll.u32 %s1700_s23, 4  ;;  %p1643_p4 = scmp.ne.s32.totalorder %s2151_s6, %s1642_s29  ;;  %s77_s24 = int_to_ptr.vmem [resolvable:$true] %s76_s24 }
  0x46   :  { %p1646_p5 = scmp.lt.u32.totalorder %s1642_s29, %s2151_s6 }
  0x48   :  { %p1648_p6 = pnand %p1646_p5, %p1643_p4 }
  0x4a   :  { %1651 = shalt.err (!%p1648_p6)
}
  0x4b   :  { %s1652_s12 = scalar_lea.vmem %s77_s24, 512  ;;  %p1657_p8 = scmp.lt.s32.totalorder %s77_s24, %s77_s24 }
  0x4c   :  { %p1653_p7 = scmp.ne.s32.totalorder %s77_s24, %s1652_s12  ;;  %p1658_p9 = scmp.lt.s32.totalorder %s1652_s12, %s1652_s12 }
  0x4e   :  { %p1659_p10 = por %p1658_p9, %p1657_p8 }
  0x50   :  { %p1660_p11 = pnand %p1659_p10, %p1653_p7 }
  0x52   :  { %1663 = shalt.err (!%p1660_p11)
}
  0x53   :  { %82 = dma.hbm_to_vmem [thread:$0]  %s2151_s6, 512, %s77_s24, [#allocation9], %s1696_s25, %s1696_s25, %s1697_s26  }
  0x54   :  { %1686 = dma.done.wait [#allocation3], 256  }
  0x55   :  { %1687 = vsyncadd [#allocation3], 4294967040 }
  0x56   :  { %1688 = dma.done.wait [#allocation6], 768  }
  0x57   :  { %1689 = vsyncadd [#allocation6], 4294966528 }
  0x58   :  { %1690 = dma.done.wait [#allocation9], 1024  }
  0x59   :  { %1691 = vsyncadd [#allocation9], 4294966272  ;;  %v122_v0 = vld [vmem:[%s2149_s4] sm:$0xff]  ;;  %v123_v1 = vld [vmem:[%s2149_s4 + $0x8] sm:$0xff]  ;;  %vm133_vm0 = vcmask 261120   ;;  %vm381_vm1 = vcmask 64512  }
  0x5a   :  { %v124_v2 = vld [vmem:[%s2149_s4 + $0x10] sm:$0xff]  ;;  %v1267_v3 = vpack.c.bf16 %v123_v1, %v122_v0  ;;  %v125_v4 = vld [vmem:[%s2149_s4 + $0x18] sm:$0xff]  ;;  %v1865_v5 = vld [vmem:[#allocation2] sm:$0xff]  ;;  %s1702_s0 = smov 120   ;;  %s1703_s20 = smov 104  }
  0x5b   :  { %v110_v6 = vld [vmem:[#allocation7] sm:$0xff]  ;;  %v1271_v7 = vpack.c.bf16 %v125_v4, %v124_v2  ;;  %v1869_v9 = vld [vmem:[#allocation2 + $0x8] sm:$0xff]  ;;  %v111_v10 = vld [vmem:[#allocation7 + $0x8] sm:$0xff]  ;;  %s1704_s23 = smov 96   ;;  %s1705_s24 = smov 64  }
  0x5c   :  { %v112_v8 = vadd.f32 %v110_v6, %v1865_v5  ;;  %1268 = vmatprep.subr.bf16.mxu0 %v1267_v3  ;;  %v106_v11 = vld [vmem:[#allocation5] sm:$0xff]  ;;  %v114_v12 = vld [vmem:[#allocation8] sm:$0xff]  ;;  %v113_v13 = vadd.f32 %v111_v10, %v1869_v9  ;;  %v107_v15 = vld [vmem:[#allocation5 + $0x8] sm:$0xff]  ;;  %s1706_s27 = smov 16   ;;  %s1707_s28 = smov 24  }
  0x5d   :  { %1270 = vmatpush3.bf16.msra.mxu0 %v1267_v3  ;;  %v118_v14 = vadd.f32 %v114_v12, %v106_v11  ;;  %v115_v16 = vld [vmem:[#allocation8 + $0x8] sm:$0xff]  ;;  %v108_v17 = vld [vmem:[#allocation5 + $0x10] sm:$0xff]  ;;  %v116_v18 = vld [vmem:[#allocation8 + $0x10] sm:$0xff]  ;;  %s1708_s12 = smov [#allocation11]  }
  0x5e   :  { %1153 = vmatprep.mubr.msk.f32.mxu0 %vm133_vm0, %v112_v8  ;;  %1272 = vmatprep.subr.bf16.mxu0 %v1271_v7  ;;  %v119_v19 = vadd.f32 %v115_v16, %v107_v15  ;;  %v120_v20 = vadd.f32 %v116_v18, %v108_v17  ;;  %v109_v21 = vld [vmem:[#allocation5 + $0x18] sm:$0xff]  ;;  %v117_v22 = vld [vmem:[#allocation8 + $0x18] sm:$0xff]  ;;  %v1884_v24 = vld [vmem:[%s2150_s5] ss:$0 sm:$0xff]  ;;  %s1701_s5 = smov 112   ;;  %s1023_s2 = sshll.u32 %s1708_s12, 4  ;;  %s1024_s2 = int_to_ptr.vmem [resolvable:$true] %s1023_s2 }
  0x5f   :  { %v121_v23 = vadd.f32 %v117_v22, %v109_v21  ;;  %vm1900_vm2 = vmpackc.low %vm381_vm1, %vm381_vm1  ;;  %s1664_s22 = scalar_lea.vmem %s1024_s2, 256  ;;  %p1669_p13 = scmp.lt.s32.totalorder %s1024_s2, %s1024_s2 }
  0x60   :  { %p1665_p12 = scmp.ne.s32.totalorder %s1024_s2, %s1664_s22  ;;  %p1670_p0 = scmp.lt.s32.totalorder %s1664_s22, %s1664_s22 }
  0x61   :  { %1274 = vmatpush3.bf16.msra.mxu0 %v1271_v7 }
  0x62   :  { %p1671_p1 = por %p1670_p0, %p1669_p13 }
  0x64   :  { %1154 = vmatmul.mubr.msk.f32.vlgmr.msra.gmra.mrb[0].mxu0 %vm133_vm0, %v113_v13  ;;  %p1672_p2 = pnand %p1671_p1, %p1665_p12 }
  0x65   :  { %1156 = vmatprep.mubr.msk.f32.mxu0 %vm133_vm0, %v118_v14 }
  0x68   :  { %1157 = vmatmul.mubr.msk.f32.gmra.mrb[2].mxu0 %vm133_vm0, %v119_v19 }
  0x69   :  { %1159 = vmatprep.mubr.msk.f32.mxu0 %vm133_vm0, %v120_v20 }
  0x6c   :  { %1160 = vmatmul.mubr.msk.f32.gmra.mrb[4].mxu0 %vm133_vm0, %v121_v23 }
  0x6d   :  { %1162 = vmatprep.mubr.msk.f32.mxu0 %vm133_vm0, %v106_v11 }
  0x70   :  { %1163 = vmatmul.mubr.msk.f32.gmra.mrb[6].mxu0 %vm133_vm0, %v107_v15 }
  0x71   :  { %1165 = vmatprep.mubr.msk.f32.mxu0 %vm133_vm0, %v108_v17 }
  0x74   :  { %1166 = vmatmul.mubr.msk.f32.gmra.mrb[8].mxu0 %vm133_vm0, %v109_v21 }
 0x137   :  { %v1155_v25 = vpop.f32.mrb[0].mxu0 }
 0x138   :  { %v230_v26 = vpop.f32.mrb[1].mxu0  ;;  %v1910_v53 = vadd.f32 %v1155_v25, %v1884_v24 }
 0x139   :  { %v231_v27 = vadd.f32 %v1884_v24, %v230_v26 }
 0x13b   :  { %v1158_v28 = vpop.f32.mrb[2].mxu0  ;;  %1200 = vmatprep.mubr.msk.f32.mxu1 %vm381_vm1, %v231_v27 }
 0x13c   :  { %v246_v29 = vadd.f32 %v1158_v28, %v1884_v24  ;;  %v240_v30 = vpop.f32.mrb[3].mxu0 }
 0x13d   :  { %v241_v31 = vadd.f32 %v1884_v24, %v240_v30 }
 0x13f   :  { %v1161_v32 = vpop.f32.mrb[4].mxu0  ;;  %v1388_v33 = vpack.i.bf16 %v246_v29, %v241_v31 }
 0x140   :  { %v256_v34 = vadd.f32 %v1161_v32, %v1884_v24  ;;  %v250_v35 = vpop.f32.mrb[5].mxu0 }
 0x141   :  { %v251_v36 = vadd.f32 %v1884_v24, %v250_v35  ;;  %1389 = vrot.lane.b32.xlu1 %v1388_v33, %s1701_s5  ;;  %1379 = vrot.lane.b32.xlu0 %v1388_v33, %s1702_s0 }
 0x143   :  { %v1393_v37 = vpack.i.bf16 %v256_v34, %v251_v36  ;;  %v1164_v54 = vpop.f32.mrb[6].mxu0 }
 0x144   :  { %v266_v55 = vadd.f32 %v1164_v54, %v1884_v24  ;;  %v260_v56 = vpop.f32.mrb[7].mxu0 }
 0x145   :  { %1394 = vrot.lane.b32.xlu1 %v1393_v37, %s1701_s5  ;;  %1384 = vrot.lane.b32.xlu0 %v1393_v37, %s1702_s0  ;;  %v261_v57 = vadd.f32 %v1884_v24, %v260_v56 }
 0x147   :  { %v1167_v58 = vpop.f32.mrb[8].mxu0  ;;  %v1448_v61 = vpack.i.bf16 %v266_v55, %v261_v57 }
 0x148   :  { %v276_v59 = vadd.f32 %v1167_v58, %v1884_v24  ;;  %v270_v60 = vpop.f32.mrb[9].mxu0 }
 0x149   :  { %1404 = vrot.lane.b32.xlu1 %v1393_v37, %s1703_s20  ;;  %1399 = vrot.lane.b32.xlu0 %v1388_v33, %s1703_s20  ;;  %v271_v62 = vadd.f32 %v1884_v24, %v270_v60 }
 0x14b   :  { %v1929_v63 = vpack.i.bf16 %v276_v59, %v271_v62 }
 0x14d   :  { %1414 = vrot.lane.b32.xlu1 %v1393_v37, %s1704_s23  ;;  %1409 = vrot.lane.b32.xlu0 %v1388_v33, %s1704_s23 }
 0x1b3   :  { %v1390_v38 = vpop.permute.xlu1 %1389  ;;  %v1380_v39 = vpop.permute.xlu0 %1379 }
 0x1b4   :  { %1419 = vrot.lane.b32.xlu0 %v1380_v39, %s1704_s23 }
 0x1b7   :  { %v1395_v40 = vpop.permute.xlu1 %1394  ;;  %v1385_v41 = vpop.permute.xlu0 %1384 }
 0x1b8   :  { %1424 = vrot.lane.b32.xlu1 %v1385_v41, %s1704_s23  ;;  %1429 = vrot.lane.b32.xlu0 %v1390_v38, %s1704_s23 }
 0x1bb   :  { %v1405_v42 = vpop.permute.xlu1 %1404  ;;  %v1400_v43 = vpop.permute.xlu0 %1399 }
 0x1bc   :  { %1434 = vrot.lane.b32.xlu1 %v1395_v40, %s1704_s23  ;;  %1439 = vrot.lane.b32.xlu0 %v1400_v43, %s1704_s23  ;;  %v535_v40 = vlaneseq }
 0x1be   :  { %v536_v41 = vshrl.u32 %v535_v40, 7  ;;  %v545_v43 = vand.u32 127, %v535_v40 }
 0x1bf   :  { %v1415_v44 = vpop.permute.xlu1 %1414  ;;  %v1410_v45 = vpop.permute.xlu0 %1409 }
 0x1c0   :  { %v1417_v46 = vunpack.i.h.bf16 %v1415_v44  ;;  %v1416_v47 = vunpack.i.l.bf16 %v1415_v44  ;;  %v1412_v48 = vunpack.i.h.bf16 %v1410_v45  ;;  %v1411_v49 = vunpack.i.l.bf16 %v1410_v45  ;;  %1444 = vrot.lane.b32.xlu1 %v1405_v42, %s1704_s23  ;;  %281 = vrot.lane.b32.xlu0 %v231_v27, %s1702_s0 }
 0x1c1   :  { %v537_v42 = vadd.s32 8, %v536_v41  ;;  %v554_v45 = vshra.s32 %v545_v43, 5  ;;  %v563_v50 = vand.u32 1, %v536_v41  ;;  %v540_v58 = vadd.s32 32, %v536_v41 }
 0x1c2   :  { %v1275_v51 = vpack.c.bf16 %v1412_v48, %v1411_v49  ;;  %v1281_v52 = vpack.c.bf16 %v1417_v46, %v1416_v47  ;;  %v571_v47 = vand.u32 1, %v545_v43  ;;  %v539_v48 = vadd.s32 24, %v536_v41 }
 0x1c3   :  { %v547_v44 = vshra.s32 %v537_v42, 4  ;;  %v564_v46 = vand.u32 1, %v537_v42  ;;  %v546_v49 = vshra.s32 %v536_v41, 4 }
 0x1c4   :  { %1277 = vmatprep.subr.msk.bf16.mxu1 %vm1900_vm2, %v1275_v51  ;;  %283 = vrot.lane.b32.xlu1 %v1910_v53, %s1702_s0  ;;  %v549_v54 = vshra.s32 %v539_v48, 4  ;;  %v566_v55 = vand.u32 1, %v539_v48  ;;  %vm1992_vm6 = vcmp.eq.s32.totalorder %v563_v50, %v571_v47 }
 0x1c5   :  { %1280 = vmatpush3.bf16.xpose.msk.msra.mxu1 %vm1900_vm2, %v1275_v51  ;;  %285 = vrot.lane.b32.xlu0 %v231_v27, %s1701_s5  ;;  %v538_v51 = vadd.s32 16, %v536_v41  ;;  %vm1980_vm3 = vcmp.eq.s32.totalorder %v547_v44, %v554_v45  ;;  %vm1984_vm4 = vcmp.eq.s32.totalorder %v564_v46, %v571_v47  ;;  %vm1988_vm5 = vcmp.eq.s32.totalorder %v546_v49, %v554_v45 }
 0x1c6   :  { %1283 = vmatprep.subr.msk.bf16.mxu1 %vm1900_vm2, %v1281_v52  ;;  %vm581_vm7 = vmand %vm1980_vm3, %vm1984_vm4  ;;  %vm2004_vm9 = vcmp.eq.s32.totalorder %v549_v54, %v554_v45  ;;  %vm2008_vm10 = vcmp.eq.s32.totalorder %v566_v55, %v571_v47 }
 0x1c7   :  { %v548_v59 = vshra.s32 %v538_v51, 4  ;;  %vm580_vm8 = vmand %vm1988_vm5, %vm1992_vm6  ;;  %v565_v62 = vand.u32 1, %v538_v51 }
 0x1c8   :  { %287 = vrot.lane.b32.xlu1 %v1910_v53, %s1701_s5  ;;  %vm583_vm11 = vmand %vm2004_vm9, %vm2008_vm10 }
 0x1c9   :  { %289 = vrot.lane.b32.xlu0 %v231_v27, %s1703_s20  ;;  %vm2016_vm12 = vcmp.eq.s32.totalorder %v548_v59, %v554_v45  ;;  %vm2020_vm13 = vcmp.eq.s32.totalorder %v565_v62, %v571_v47 }
 0x1cc   :  { %291 = vrot.lane.b32.xlu1 %v1910_v53, %s1703_s20 }
 0x1cd   :  { %1286 = vmatpush3.bf16.xpose.msk.msra.mxu1 %vm1900_vm2, %v1281_v52  ;;  %1454 = vrot.lane.b32.xlu0 %v1929_v63, %s1702_s0 }
 0x1d0   :  { %1449 = vrot.lane.b32.xlu1 %v1448_v61, %s1702_s0 }
 0x1d1   :  { %1469 = vrot.lane.b32.xlu0 %v1448_v61, %s1703_s20 }
 0x1d4   :  { %1459 = vrot.lane.b32.xlu1 %v1448_v61, %s1701_s5 }
 0x1d8   :  { %1464 = vrot.lane.b32.xlu1 %v1929_v63, %s1701_s5 }
 0x1dc   :  { %1474 = vrot.lane.b32.xlu1 %v1929_v63, %s1703_s20 }
 0x1e0   :  { %1479 = vrot.lane.b32.xlu1 %v1448_v61, %s1705_s24 }
 0x226   :  { %v1420_v0 = vpop.permute.xlu0 %1419 }
 0x227   :  { %v1422_v1 = vunpack.i.h.bf16 %v1420_v0  ;;  %v1421_v2 = vunpack.i.l.bf16 %v1420_v0  ;;  %v541_v0 = vadd.s32 40, %v536_v41 }
 0x229   :  { %v1287_v3 = vpack.c.bf16 %v1422_v1, %v1421_v2  ;;  %v550_v2 = vshra.s32 %v540_v58, 4 }
 0x22a   :  { %v1425_v4 = vpop.permute.xlu1 %1424  ;;  %v1430_v8 = vpop.permute.xlu0 %1429 }
 0x22b   :  { %v1427_v6 = vunpack.i.h.bf16 %v1425_v4  ;;  %v1426_v7 = vunpack.i.l.bf16 %v1425_v4  ;;  %1289 = vmatprep.subr.msk.bf16.mxu1 %vm1900_vm2, %v1287_v3  ;;  %v1432_v11 = vunpack.i.h.bf16 %v1430_v8  ;;  %v1431_v12 = vunpack.i.l.bf16 %v1430_v8 }
 0x22c   :  { %1292 = vmatpush3.bf16.xpose.msk.msra.mxu1 %vm1900_vm2, %v1287_v3  ;;  %v567_v3 = vand.u32 1, %v540_v58  ;;  %v542_v4 = vadd.s32 48, %v536_v41  ;;  %vm2024_vm14 = vcmp.eq.s32.totalorder %v550_v2, %v554_v45 }
 0x22d   :  { %v1293_v10 = vpack.c.bf16 %v1427_v6, %v1426_v7  ;;  %v1299_v13 = vpack.c.bf16 %v1432_v11, %v1431_v12  ;;  %v551_v12 = vshra.s32 %v541_v0, 4 }
 0x22e   :  { %v1435_v14 = vpop.permute.xlu1 %1434  ;;  %v1440_v18 = vpop.permute.xlu0 %1439  ;;  %vm2028_vm15 = vcmp.eq.s32.totalorder %v567_v3, %v571_v47 }
 0x22f   :  { %1295 = vmatprep.subr.msk.bf16.mxu1 %vm1900_vm2, %v1293_v10  ;;  %v1437_v15 = vunpack.i.h.bf16 %v1435_v14  ;;  %v1436_v16 = vunpack.i.l.bf16 %v1435_v14  ;;  %v1442_v19 = vunpack.i.h.bf16 %v1440_v18  ;;  %v1441_v20 = vunpack.i.l.bf16 %v1440_v18  ;;  %vm584_vm3 = vmand %vm2024_vm14, %vm2028_vm15 }
 0x230   :  { %v543_v14 = vadd.s32 56, %v536_v41  ;;  %v552_v18 = vshra.s32 %v542_v4, 4  ;;  %vm2040_vm4 = vcmp.eq.s32.totalorder %v551_v12, %v554_v45  ;;  %vm874_vm14 = vcmask 195584  }
 0x231   :  { %v1305_v17 = vpack.c.bf16 %v1437_v15, %v1436_v16  ;;  %v1311_v21 = vpack.c.bf16 %v1442_v19, %v1441_v20  ;;  %v569_v19 = vand.u32 1, %v542_v4 }
 0x232   :  { %v1445_v22 = vpop.permute.xlu1 %1444  ;;  %v282_v26 = vpop.permute.xlu0 %281  ;;  %vm2048_vm6 = vcmp.eq.s32.totalorder %v552_v18, %v554_v45 }
 0x233   :  { %v1447_v23 = vunpack.i.h.bf16 %v1445_v22  ;;  %v1446_v24 = vunpack.i.l.bf16 %v1445_v22 }
 0x234   :  { %1298 = vmatpush3.bf16.xpose.msk.msra.mxu1 %vm1900_vm2, %v1293_v10 }
 0x235   :  { %1301 = vmatprep.subr.msk.bf16.mxu1 %vm1900_vm2, %v1299_v13  ;;  %v1317_v25 = vpack.c.bf16 %v1447_v23, %v1446_v24 }
 0x236   :  { %v284_v27 = vpop.permute.xlu1 %283 }
 0x237   :  { %v286_v28 = vpop.permute.xlu0 %285 }
 0x23a   :  { %v288_v29 = vpop.permute.xlu1 %287 }
 0x23b   :  { %v290_v30 = vpop.permute.xlu0 %289 }
 0x23c   :  { %1304 = vmatpush3.bf16.xpose.msk.msra.mxu1 %vm1900_vm2, %v1299_v13  ;;  %v568_v13 = vand.u32 1, %v541_v0 }
 0x23d   :  { %1307 = vmatprep.subr.msk.bf16.mxu1 %vm1900_vm2, %v1305_v17 }
 0x23e   :  { %v292_v31 = vpop.permute.xlu1 %291  ;;  %vm2044_vm5 = vcmp.eq.s32.totalorder %v568_v13, %v571_v47 }
 0x23f   :  { %v1455_v41 = vpop.permute.xlu0 %1454 }
 0x242   :  { %v1972_v32 = vpop.permute.xlu1 %1449 }
 0x243   :  { %v2069_v42 = vpop.permute.xlu0 %1469 }
 0x244   :  { %1310 = vmatpush3.bf16.xpose.msk.msra.mxu1 %vm1900_vm2, %v1305_v17 }
 0x245   :  { %1313 = vmatprep.subr.msk.bf16.mxu1 %vm1900_vm2, %v1311_v21 }
 0x246   :  { %v1974_v33 = vpop.permute.xlu1 %1459 }
 0x24a   :  { %v1976_v34 = vpop.permute.xlu1 %1464 }
 0x24c   :  { %1316 = vmatpush3.bf16.xpose.msk.msra.mxu1 %vm1900_vm2, %v1311_v21 }
 0x24d   :  { %1319 = vmatprep.subr.msk.bf16.mxu1 %vm1900_vm2, %v1317_v25 }
 0x24e   :  { %v1978_v35 = vpop.permute.xlu1 %1474 }
 0x252   :  { %v1480_v36 = vpop.permute.xlu1 %1479 }
 0x253   :  { %v1482_v37 = vunpack.i.h.bf16 %v1480_v36  ;;  %v1481_v38 = vunpack.i.l.bf16 %v1480_v36 }
 0x254   :  { %1322 = vmatpush3.bf16.xpose.msk.msra.mxu1 %vm1900_vm2, %v1317_v25  ;;  %vm582_vm2 = vmand %vm2016_vm12, %vm2020_vm13  ;;  %vm871_vm13 = vcmask 130048  }
 0x255   :  { %v1323_v39 = vpack.c.bf16 %v1482_v37, %v1481_v38 }
 0x257   :  { %1324 = vmatprep.subr.bf16.mxu0 %v1323_v39 }
 0x258   :  { %1326 = vmatpush3.bf16.msra.mxu0 %v1323_v39 }
 0x25b   :  { %1201 = vmatmul.mubr.msk.f32.vlgmr.msra.gmra.mrb[0].mxu1 %vm381_vm1, %v1910_v53 }
 0x25c   :  { %1203 = vmatprep.mubr.msk.f32.mxu1 %vm381_vm1, %v282_v26 }
 0x25f   :  { %1204 = vmatmul.mubr.msk.f32.gmra.mrb[2].mxu1 %vm381_vm1, %v284_v27  ;;  %v553_v27 = vshra.s32 %v543_v14, 4 }
 0x260   :  { %1206 = vmatprep.mubr.msk.f32.mxu1 %vm381_vm1, %v286_v28  ;;  %v570_v28 = vand.u32 1, %v543_v14 }
 0x261   :  { %vm562_vm10 = vcmp.eq.s32.totalorder %v553_v27, %v554_v45 }
 0x263   :  { %1207 = vmatmul.mubr.msk.f32.gmra.mrb[4].mxu1 %vm381_vm1, %v288_v29 }
 0x264   :  { %1209 = vmatprep.mubr.msk.f32.mxu1 %vm381_vm1, %v290_v30 }
 0x267   :  { %1210 = vmatmul.mubr.msk.f32.gmra.mrb[6].mxu1 %vm381_vm1, %v292_v31 }
 0x32e   :  { %v1202_v1 = vpop.f32.mrb[0].mxu1 }
 0x32f   :  { %v496_v6 = vpop.f32.mrb[1].mxu1  ;;  %v589_v7 = vsel %vm581_vm7, %v1202_v1, -1e+30  ;;  %vm2052_vm7 = vcmp.eq.s32.totalorder %v569_v19, %v571_v47 }
 0x330   :  { %598 = vmax.xlane.f32.xlu1 %v589_v7  ;;  %v588_v8 = vsel %vm580_vm8, %v496_v6, -1e+30  ;;  %vm585_vm8 = vmand %vm2040_vm4, %vm2044_vm5 }
 0x331   :  { %596 = vmax.xlane.f32.xlu0 %v588_v8  ;;  %vm586_vm9 = vmand %vm2048_vm6, %vm2052_vm7 }
 0x332   :  { %v1205_v15 = vpop.f32.mrb[2].mxu1 }
 0x333   :  { %v506_v20 = vpop.f32.mrb[3].mxu1  ;;  %v591_v21 = vsel %vm583_vm11, %v1205_v15, -1e+30  ;;  %vm579_vm11 = vcmp.eq.s32.totalorder %v570_v28, %v571_v47 }
 0x334   :  { %v590_v30 = vsel %vm582_vm2, %v506_v20, -1e+30  ;;  %vm587_vm12 = vmand %vm562_vm10, %vm579_vm11 }
 0x335   :  { %602 = vmax.xlane.f32.xlu0 %v591_v21 }
 0x336   :  { %v1208_v24 = vpop.f32.mrb[4].mxu1 }
 0x337   :  { %v516_v29 = vpop.f32.mrb[5].mxu1  ;;  %v593_v38 = vsel %vm585_vm8, %v1208_v24, -1e+30 }
 0x338   :  { %v592_v31 = vsel %vm584_vm3, %v516_v29, -1e+30 }
 0x339   :  { %600 = vmax.xlane.f32.xlu0 %v590_v30  ;;  %604 = vmax.xlane.f32.xlu1 %v592_v31 }
 0x33a   :  { %v1211_v36 = vpop.f32.mrb[6].mxu1 }
 0x33b   :  { %v526_v37 = vpop.f32.mrb[7].mxu1  ;;  %v595_v40 = vsel %vm587_vm12, %v1211_v36, -1e+30 }
 0x33c   :  { %v594_v39 = vsel %vm586_vm9, %v526_v37, -1e+30 }
 0x33d   :  { %606 = vmax.xlane.f32.xlu0 %v593_v38  ;;  %608 = vmax.xlane.f32.xlu1 %v594_v39 }
 0x341   :  { %610 = vmax.xlane.f32.xlu0 %v595_v40 }
 0x34e   :  { %1489 = vrot.lane.b32.xlu1 %v1972_v32, %s1705_s24 }
 0x357   :  { %1484 = vrot.lane.b32.xlu0 %v1929_v63, %s1705_s24 }
 0x35b   :  { %1494 = vrot.lane.b32.xlu0 %v1455_v41, %s1705_s24 }
 0x3bd   :  { %v599_v43 = vpop.xlane.xlu1 %598 }
 0x3be   :  { %v613_v44 = vsub.f32 %v589_v7, %v599_v43  ;;  %v597_v45 = vpop.xlane.xlu0 %596 }
 0x3bf   :  { %v612_v46 = vsub.f32 %v588_v8, %v597_v45 }
 0x3c0   :  { %v622_v47 = vmul.f32 1.442695, %v613_v44 }
 0x3c1   :  { %v620_v48 = vmul.f32 1.442695, %v612_v46 }
 0x3c2   :  { %1518 = vpow2.f32 %v622_v47  ;;  %v603_v49 = vpop.xlane.xlu0 %602 }
 0x3c3   :  { %1520 = vpow2.f32 %v620_v48  ;;  %v615_v50 = vsub.f32 %v591_v21, %v603_v49 }
 0x3c5   :  { %v626_v51 = vmul.f32 1.442695, %v615_v50 }
 0x3c6   :  { %v601_v32 = vpop.xlane.xlu0 %600  ;;  %v605_v52 = vpop.xlane.xlu1 %604 }
 0x3c7   :  { %1522 = vpow2.f32 %v626_v51  ;;  %v614_v53 = vsub.f32 %v590_v30, %v601_v32  ;;  %v616_v63 = vsub.f32 %v592_v31, %v605_v52 }
 0x3c9   :  { %v624_v54 = vmul.f32 1.442695, %v614_v53  ;;  %v628_v55 = vmul.f32 1.442695, %v616_v63 }
 0x3ca   :  { %v607_v56 = vpop.xlane.xlu0 %606  ;;  %v609_v57 = vpop.xlane.xlu1 %608 }
 0x3cb   :  { %1524 = vpow2.f32 %v624_v54  ;;  %v617_v58 = vsub.f32 %v593_v38, %v607_v56  ;;  %v618_v1 = vsub.f32 %v594_v39, %v609_v57 }
 0x3cc   :  { %v2071_v59 = vpop.eup %1518  ;;  %1526 = vpow2.f32 %v628_v55 }
 0x3cd   :  { %v1521_v60 = vpop.eup %1520  ;;  %v630_v61 = vmul.f32 1.442695, %v617_v58  ;;  %638 = vadd.xlane.f32.xlu1 %v2071_v59  ;;  %v632_v10 = vmul.f32 1.442695, %v618_v1 }
 0x3ce   :  { %636 = vadd.xlane.f32.xlu0 %v1521_v60  ;;  %v611_v62 = vpop.xlane.xlu0 %610  ;;  %v1490_v0 = vpop.permute.xlu1 %1489 }
 0x3cf   :  { %1528 = vpow2.f32 %v630_v61  ;;  %v619_v2 = vsub.f32 %v595_v40, %v611_v62  ;;  %v1492_v6 = vunpack.i.h.bf16 %v1490_v0  ;;  %v1491_v7 = vunpack.i.l.bf16 %v1490_v0 }
 0x3d1   :  { %v2074_v3 = vpop.eup %1522  ;;  %v634_v4 = vmul.f32 1.442695, %v619_v2  ;;  %v1331_v15 = vpack.c.bf16 %v1492_v6, %v1491_v7 }
 0x3d2   :  { %v1485_v8 = vpop.permute.xlu0 %1484  ;;  %642 = vadd.xlane.f32.xlu1 %v2074_v3 }
 0x3d3   :  { %1530 = vpow2.f32 %v634_v4  ;;  %v1487_v11 = vunpack.i.h.bf16 %v1485_v8  ;;  %v1486_v12 = vunpack.i.l.bf16 %v1485_v8 }
 0x3d4   :  { %1532 = vpow2.f32 %v632_v10 }
 0x3d5   :  { %v2077_v13 = vpop.eup %1524  ;;  %v1327_v14 = vpack.c.bf16 %v1487_v11, %v1486_v12 }
 0x3d6   :  { %v2079_v16 = vpop.eup %1526  ;;  %640 = vadd.xlane.f32.xlu0 %v2077_v13  ;;  %v1495_v17 = vpop.permute.xlu0 %1494 }
 0x3d7   :  { %644 = vadd.xlane.f32.xlu1 %v2079_v16  ;;  %1328 = vmatprep.subr.bf16.mxu0 %v1327_v14  ;;  %v1497_v18 = vunpack.i.h.bf16 %v1495_v17  ;;  %v1496_v19 = vunpack.i.l.bf16 %v1495_v17 }
 0x3d8   :  { %1330 = vmatpush3.bf16.msra.mxu0 %v1327_v14 }
 0x3d9   :  { %v2083_v20 = vpop.eup %1528  ;;  %1332 = vmatprep.subr.bf16.mxu0 %v1331_v15  ;;  %v1335_v21 = vpack.c.bf16 %v1497_v18, %v1496_v19 }
 0x3da   :  { %646 = vadd.xlane.f32.xlu0 %v2083_v20 }
 0x3dc   :  { %1334 = vmatpush3.bf16.msra.mxu0 %v1331_v15 }
 0x3dd   :  { %v2086_v22 = vpop.eup %1530  ;;  %1336 = vmatprep.subr.bf16.mxu0 %v1335_v21 }
 0x3de   :  { %650 = vadd.xlane.f32.xlu1 %v2086_v22  ;;  %v2089_v23 = vpop.eup %1532 }
 0x3e0   :  { %1338 = vmatpush3.bf16.msra.mxu0 %v1335_v21 }
 0x3e2   :  { %648 = vadd.xlane.f32.xlu1 %v2089_v23 }
 0x3f0   :  { %1504 = vrot.lane.b32.xlu0 %v1976_v34, %s1705_s24 }
 0x3f3   :  { %1499 = vrot.lane.b32.xlu1 %v1974_v33, %s1705_s24 }
 0x3f4   :  { %1509 = vrot.lane.b32.xlu0 %v2069_v42, %s1705_s24 }
 0x3f8   :  { %1514 = vrot.lane.b32.xlu0 %v1978_v35, %s1705_s24 }
 0x45a   :  { %v639_v24 = vpop.xlane.xlu1 %638 }
 0x45b   :  { %v637_v25 = vpop.xlane.xlu0 %636 }
 0x45c   :  { %1534 = vrcp.f32 %v637_v25 }
 0x45d   :  { %1536 = vrcp.f32 %v639_v24 }
 0x45f   :  { %v643_v26 = vpop.xlane.xlu1 %642 }
 0x463   :  { %v641_v27 = vpop.xlane.xlu0 %640 }
 0x464   :  { %v645_v30 = vpop.xlane.xlu1 %644  ;;  %1538 = vrcp.f32 %v641_v27 }
 0x465   :  { %1540 = vrcp.f32 %v643_v26 }
 0x466   :  { %v1535_v28 = vpop.eup %1534  ;;  %1542 = vrcp.f32 %v645_v30 }
 0x467   :  { %v660_v29 = vmul.f32 %v1535_v28, %v637_v25  ;;  %v647_v31 = vpop.xlane.xlu0 %646  ;;  %v1537_v46 = vpop.eup %1536 }
 0x468   :  { %1544 = vrcp.f32 %v647_v31  ;;  %v661_v32 = vmul.f32 %v1537_v46, %v639_v24 }
 0x469   :  { %v668_v36 = vsub.f32 2.0, %v660_v29 }
 0x46a   :  { %v669_v57 = vsub.f32 2.0, %v661_v32 }
 0x46b   :  { %v676_v34 = vmul.f32 %v1535_v28, %v668_v36  ;;  %v651_v37 = vpop.xlane.xlu1 %650  ;;  %v1505_v33 = vpop.permute.xlu0 %1504  ;;  %v878_v36 = vld [vmem:[#allocation10 + $0x8] sm:$0xff] }
 0x46c   :  { %v1507_v42 = vunpack.i.h.bf16 %v1505_v33  ;;  %v1506_v43 = vunpack.i.l.bf16 %v1505_v33  ;;  %v677_v2 = vmul.f32 %v1537_v46, %v669_v57 }
 0x46d   :  { %v684_v38 = vmul.f32 %v1521_v60, %v676_v34 }
 0x46e   :  { %v1539_v47 = vpop.eup %1538  ;;  %v1343_v48 = vpack.c.bf16 %v1507_v42, %v1506_v43  ;;  %v685_v12 = vmul.f32 %v2071_v59, %v677_v2 }
 0x46f   :  { %1244 = vmatprep.mubr.f32.mxu0 %v684_v38  ;;  %v649_v39 = vpop.xlane.xlu1 %648  ;;  %v1510_v40 = vpop.permute.xlu0 %1509  ;;  %v662_v53 = vmul.f32 %v1539_v47, %v641_v27 }
 0x470   :  { %1546 = vrcp.f32 %v649_v39  ;;  %v1512_v49 = vunpack.i.h.bf16 %v1510_v40  ;;  %v1511_v50 = vunpack.i.l.bf16 %v1510_v40  ;;  %v1541_v52 = vpop.eup %1540 }
 0x471   :  { %1548 = vrcp.f32 %v651_v37  ;;  %v1543_v63 = vpop.eup %1542  ;;  %v663_v58 = vmul.f32 %v1541_v52, %v643_v26  ;;  %v670_v61 = vsub.f32 2.0, %v662_v53 }
 0x472   :  { %v1347_v54 = vpack.c.bf16 %v1512_v49, %v1511_v50  ;;  %v1545_v60 = vpop.eup %1544  ;;  %v664_v62 = vmul.f32 %v1543_v63, %v645_v30 }
 0x473   :  { %v1500_v35 = vpop.permute.xlu1 %1499  ;;  %v1515_v51 = vpop.permute.xlu0 %1514  ;;  %v671_v4 = vsub.f32 2.0, %v663_v58  ;;  %v665_v6 = vmul.f32 %v1545_v60, %v647_v31  ;;  %v678_v8 = vmul.f32 %v1539_v47, %v670_v61  ;;  %v877_v31 = vld [vmem:[#allocation10] sm:$0xff] }
 0x474   :  { %v1502_v41 = vunpack.i.h.bf16 %v1500_v35  ;;  %v1501_v44 = vunpack.i.l.bf16 %v1500_v35  ;;  %v1517_v55 = vunpack.i.h.bf16 %v1515_v51  ;;  %v1516_v56 = vunpack.i.l.bf16 %v1515_v51 }
 0x475   :  { %v672_v10 = vsub.f32 2.0, %v664_v62  ;;  %v679_v14 = vmul.f32 %v1541_v52, %v671_v4  ;;  %v673_v15 = vsub.f32 2.0, %v665_v6  ;;  %v686_v21 = vmul.f32 %v2077_v13, %v678_v8  ;;  %v1072_v52 = vld [vmem:[%s2152_s7] ss:$0 sm:$0xff] }
 0x476   :  { %v1339_v45 = vpack.c.bf16 %v1502_v41, %v1501_v44  ;;  %v1351_v1 = vpack.c.bf16 %v1517_v55, %v1516_v56  ;;  %v1355_v34 = vpack.c.bf16 %v878_v36, %v877_v31 }
 0x477   :  { %v680_v18 = vmul.f32 %v1543_v63, %v672_v10  ;;  %v681_v24 = vmul.f32 %v1545_v60, %v673_v15  ;;  %v687_v26 = vmul.f32 %v2074_v3, %v679_v14  ;;  %v879_v3 = vld [vmem:[#allocation10 + $0x10] sm:$0xff] }
 0x478   :  { %1340 = vmatprep.subr.bf16.mxu0 %v1339_v45 }
 0x479   :  { %1342 = vmatpush3.bf16.msra.mxu0 %v1339_v45  ;;  %v688_v28 = vmul.f32 %v2079_v16, %v680_v18  ;;  %v689_v59 = vmul.f32 %v2083_v20, %v681_v24  ;;  %v1075_v18 = vld [vmem:[%s2153_s8] ss:$0 sm:$0xff] }
 0x47a   :  { %1344 = vmatprep.subr.bf16.mxu0 %v1343_v48  ;;  %v1547_v0 = vpop.eup %1546 }
 0x47b   :  { %v1549_v7 = vpop.eup %1548  ;;  %v666_v11 = vmul.f32 %v1547_v0, %v649_v39 }
 0x47c   :  { %v667_v17 = vmul.f32 %v1549_v7, %v651_v37  ;;  %v880_v37 = vld [vmem:[#allocation10 + $0x18] sm:$0xff] }
 0x47d   :  { %1346 = vmatpush3.bf16.msra.mxu0 %v1343_v48  ;;  %v674_v19 = vsub.f32 2.0, %v666_v11  ;;  %v1359_v16 = vpack.c.bf16 %v880_v37, %v879_v3 }
 0x47e   :  { %1348 = vmatprep.subr.bf16.mxu0 %v1347_v54  ;;  %v675_v25 = vsub.f32 2.0, %v667_v17 }
 0x47f   :  { %v682_v27 = vmul.f32 %v1547_v0, %v674_v19 }
 0x480   :  { %v683_v29 = vmul.f32 %v1549_v7, %v675_v25 }
 0x481   :  { %1350 = vmatpush3.bf16.msra.mxu0 %v1347_v54  ;;  %v690_v30 = vmul.f32 %v2089_v23, %v682_v27 }
 0x482   :  { %1352 = vmatprep.subr.bf16.mxu0 %v1351_v1  ;;  %v691_v13 = vmul.f32 %v2086_v22, %v683_v29 }
 0x485   :  { %1354 = vmatpush3.bf16.msra.mxu0 %v1351_v1 }
 0x486   :  { %1356 = vmatprep.subr.bf16.mxu0 %v1355_v34 }
 0x488   :  { %1245 = vmatmul.mubr.f32.vlgmr.msra.gmra.mrb[10].mxu0 %v685_v12 }
 0x489   :  { %1247 = vmatprep.mubr.f32.mxu0 %v686_v21  ;;  %1358 = vmatpush3.bf16.msra.mxu0 %v1355_v34  ;;  %v1076_v21 = vld [vmem:[%s2154_s9] ss:$0 sm:$0xff] }
 0x48a   :  { %1360 = vmatprep.subr.bf16.mxu0 %v1359_v16 }
 0x48c   :  { %1248 = vmatmul.mubr.f32.gmra.mrb[12].mxu0 %v687_v26 }
 0x48d   :  { %1250 = vmatprep.mubr.f32.mxu0 %v688_v28  ;;  %1362 = vmatpush3.bf16.msra.mxu0 %v1359_v16 }
 0x490   :  { %1251 = vmatmul.mubr.f32.gmra.mrb[14].mxu0 %v689_v59 }
 0x491   :  { %1253 = vmatprep.mubr.f32.mxu0 %v690_v30 }
 0x494   :  { %1254 = vmatmul.mubr.f32.gmra.mrb[16].mxu0 %v691_v13 }
 0x55b   :  { %v1246_v38 = vpop.f32.mrb[10].mxu0 }
 0x55c   :  { %v806_v33 = vpop.f32.mrb[11].mxu0 }
 0x55f   :  { %v1249_v20 = vpop.f32.mrb[12].mxu0 }
 0x560   :  { %849 = vrot.lane.b32.xlu1 %v1249_v20, %s1697_s26  ;;  %v816_v23 = vpop.f32.mrb[13].mxu0 }
 0x561   :  { %847 = vrot.lane.b32.xlu0 %v816_v23, %s1697_s26 }
 0x563   :  { %v1252_v22 = vpop.f32.mrb[14].mxu0 }
 0x564   :  { %857 = vrot.lane.b32.xlu1 %v1252_v22, %s1706_s27  ;;  %v826_v39 = vpop.f32.mrb[15].mxu0 }
 0x565   :  { %855 = vrot.lane.b32.xlu0 %v826_v39, %s1706_s27 }
 0x567   :  { %v1255_v35 = vpop.f32.mrb[16].mxu0 }
 0x568   :  { %865 = vrot.lane.b32.xlu1 %v1255_v35, %s1707_s28  ;;  %v836_v40 = vpop.f32.mrb[17].mxu0 }
 0x569   :  { %863 = vrot.lane.b32.xlu0 %v836_v40, %s1707_s28 }
 0x5d2   :  { %v850_v41 = vpop.permute.xlu1 %849 }
 0x5d3   :  { %v848_v42 = vpop.permute.xlu0 %847  ;;  %v870_v47 = vsel %vm381_vm1, %v1246_v38, %v850_v41 }
 0x5d4   :  { %v869_v45 = vsel %vm381_vm1, %v806_v33, %v848_v42 }
 0x5d6   :  { %v858_v43 = vpop.permute.xlu1 %857 }
 0x5d7   :  { %v856_v44 = vpop.permute.xlu0 %855  ;;  %v873_v50 = vsel %vm871_vm13, %v870_v47, %v858_v43 }
 0x5d8   :  { %v872_v48 = vsel %vm871_vm13, %v869_v45, %v856_v44 }
 0x5da   :  { %v866_v46 = vpop.permute.xlu1 %865 }
 0x5db   :  { %v864_v49 = vpop.permute.xlu0 %863  ;;  %v876_v32 = vsel %vm874_vm14, %v873_v50, %v866_v46 }
 0x5dc   :  { %v875_v51 = vsel %vm874_vm14, %v872_v48, %v864_v49 }
 0x5dd   :  { %1264 = vmatprep.mubr.msk.f32.mxu0 %vm133_vm0, %v875_v51 }
 0x5de   :  { %1265 = vmatmul.mubr.msk.f32.vlgmr.msra.gmra.mrb[18].mxu0 %vm133_vm0, %v876_v32 }
 0x6b1   :  { %v1266_v53 = vpop.f32.mrb[18].mxu0 }
 0x6b2   :  { %v966_v63 = vadd.f32 %v1266_v53, %v1072_v52  ;;  %v960_v54 = vpop.f32.mrb[19].mxu0 }
 0x6b3   :  { %v961_v55 = vadd.f32 %v1072_v52, %v960_v54 }
 0x6b4   :  { %v970_v56 = vadd.f32 %v966_v63, %v1869_v9 }
 0x6b5   :  { %v969_v57 = vadd.f32 %v961_v55, %v1865_v5 }
 0x6b6   :  { %v974_v58 = vsel %vm133_vm0, %v970_v56, 0.0 }
 0x6b7   :  { %975 = vadd.xlane.f32.xlu1 %v974_v58  ;;  %v971_v60 = vsel %vm133_vm0, %v969_v57, 0.0 }
 0x6b8   :  { %972 = vadd.xlane.f32.xlu0 %v971_v60 }
 0x744   :  { %v976_v61 = vpop.xlane.xlu1 %975 }
 0x745   :  { %v979_v62 = vmul.f32 0.03125, %v976_v61  ;;  %v973_v0 = vpop.xlane.xlu0 %972 }
 0x746   :  { %v978_v1 = vmul.f32 0.03125, %v973_v0 }
 0x747   :  { %v981_v2 = vsub.f32 %v970_v56, %v979_v62 }
 0x748   :  { %v980_v4 = vsub.f32 %v969_v57, %v978_v1 }
 0x749   :  { %v983_v8 = vmul.f32 %v981_v2, %v981_v2 }
 0x74a   :  { %v982_v6 = vmul.f32 %v980_v4, %v980_v4 }
 0x74b   :  { %v987_v9 = vsel %vm133_vm0, %v983_v8, 0.0 }
 0x74c   :  { %v984_v7 = vsel %vm133_vm0, %v982_v6, 0.0 }
 0x74d   :  { %985 = vadd.xlane.f32.xlu0 %v984_v7 }
 0x751   :  { %988 = vadd.xlane.f32.xlu0 %v987_v9 }
 0x7da   :  { %v986_v5 = vpop.xlane.xlu0 %985 }
 0x7db   :  { %v990_v10 = vmul.f32 0.03125, %v986_v5 }
 0x7dd   :  { %v992_v11 = vadd.f32 1e-05, %v990_v10 }
 0x7de   :  { %v989_v12 = vpop.xlane.xlu0 %988 }
 0x7df   :  { %1550 = vrsqrt.f32 %v992_v11  ;;  %v991_v14 = vmul.f32 0.03125, %v989_v12 }
 0x7e1   :  { %v993_v15 = vadd.f32 1e-05, %v991_v14 }
 0x7e3   :  { %1552 = vrsqrt.f32 %v993_v15 }
 0x7e9   :  { %v1551_v17 = vpop.eup %1550 }
 0x7ea   :  { %v996_v19 = vmul.f32 %v1551_v17, %v980_v4 }
 0x7ec   :  { %v1005_v24 = vmul.f32 %v1075_v18, %v996_v19 }
 0x7ed   :  { %v1553_v25 = vpop.eup %1552 }
 0x7ee   :  { %v997_v26 = vmul.f32 %v1553_v25, %v981_v2  ;;  %v1014_v27 = vadd.f32 %v1076_v21, %v1005_v24 }
 0x7f0   :  { %v1006_v28 = vmul.f32 %v1075_v18, %v997_v26  ;;  %1016 = vst.msk [vmem:[#allocation11] sm:$0xff] %vm133_vm0, %v1014_v27 }
 0x7f2   :  { %v1015_v29 = vadd.f32 %v1076_v21, %v1006_v28 }
 0x7f4   :  { %1017 = vst.msk [vmem:[#allocation11 + $0x8] sm:$0xff] %vm133_vm0, %v1015_v29 }
 0x7f5   :  { %1675 = shalt.err (!%p1672_p2)
}
 0x7f6   :  { %s1676_s13 = scalar_lea.hbm %s2155_s10, 256 }
 0x7f7   :  { %p1677_p3 = scmp.ne.s32.totalorder %s2155_s10, %s1676_s13  ;;  %p1680_p4 = scmp.lt.u32.totalorder %s1676_s13, %s2155_s10 }
 0x7f9   :  { %p1682_p5 = pnand %p1680_p4, %p1677_p3 }
 0x7fb   :  { %1685 = shalt.err (!%p1682_p5)
}
 0x7fc   :  { %1029 = dma.vmem_to_hbm [thread:$0]  %s1024_s2, 256, %s2155_s10, [#allocation4], %s1696_s25, %s1696_s25, %s1697_s26  }
 0x7fd   :  { %1692 = dma.done.wait [#allocation4], 256  }
 0x7fe   :  { %1693 = vsyncadd [#allocation4], 4294967040 }
 0x7ff   :  { %1033 = vsyncpa [#allocation3], 1 }
 0x800   :  { %1034 = vsyncpa [#allocation6], 1 }
 0x801   :  { %1035 = vsyncpa [#allocation9], 1 }
 0x802   :  { %1036 = vsyncpa [#allocation4], 1 }

</bundles_post_ra>
